<compile_context>
chip_gen: v7x
topology: tpu7x:2x2x1
jax: 0.10.0
libtpu: 0.0.40
codegen_flags: <defaults>
</compile_context>

<pallas_src>
import math

import jax
import jax.numpy as jnp
from jax import lax
from jax.experimental import pallas as pl
from jax.experimental.pallas import tpu as pltpu


def _pos_encoding_kernel(cols_ref, o_ref):
    """Fill one (tile_r, row_elems) tile of the packed table.

    Packed layout: packed[R, C] = E[R*pack + C // d_model, C % d_model], where
    E is the (max_len, d_model) sinusoidal table.  All per-column math is
    pre-folded into cols_ref = [col_scale; col_bias], so the per-element work
    is a single fused affine + sin:  sin(row * scale + bias).
    """
    tile_r = o_ref.shape[0]
    scale = cols_ref[0:1, :]          # (1, row_elems), resident across grid steps
    bias = cols_ref[1:2, :]           # (1, row_elems)
    base = pl.program_id(0) * tile_r
    row = (lax.broadcasted_iota(jnp.int32, (tile_r, 1), 0) + base).astype(jnp.float32)
    o_ref[...] = jnp.sin(row * scale + bias)


def _round_up(x: int, m: int) -> int:
    return ((x + m - 1) // m) * m


def make_positional_encoding(max_len: int, d_model: int) -> jax.Array:
    """Build the (max_len, d_model) f32 encoding table with a tiled Pallas call."""
    # --- pack rows so the output last dim is a multiple of 128 (lane-dense) ----
    pack = 128 // math.gcd(d_model, 128)          # pack * d_model == lcm(d_model, 128)
    row_elems = pack * d_model                    # multiple of 128

    padded_len = _round_up(max_len, pack)         # pad positions instead of dropping packing
    packed_rows = padded_len // pack

    # --- tile selection: ~8 MiB output tiles, multiple of 8 rows, grid >= 2 ----
    tile_budget_bytes = 8 * 1024 * 1024
    budget_rows = max(8, (tile_budget_bytes // (row_elems * 4)) // 8 * 8)
    half_rows = max(8, _round_up(pl.cdiv(packed_rows, 2), 8))   # never one whole-table step
    tile_r = min(budget_rows, half_rows)
    grid_n = pl.cdiv(packed_rows, tile_r)
    packed_rows_padded = grid_n * tile_r          # padded rows are sliced off below

    # --- per-column constants, hoisted out of the kernel (tiny, loaded once) ---
    c = jnp.arange(row_elems, dtype=jnp.int32)
    j = c % d_model                                        # original feature index
    p_off = (c // d_model).astype(jnp.float32)             # row offset inside a packed row
    two_i = (j & ~1).astype(jnp.float32)                   # 2 * (j // 2)
    inv_denom = jnp.exp(-(two_i / jnp.float32(d_model)) * jnp.log(jnp.float32(10000.0)))
    phase = jnp.where((j & 1) == 1, jnp.float32(math.pi / 2.0), jnp.float32(0.0))
    col_scale = jnp.float32(pack) * inv_denom              # angle = row*scale + bias
    col_bias = p_off * inv_denom + phase
    cols = jnp.stack([col_scale, col_bias], axis=0)        # (2, row_elems) f32

    # Explicit scoped-VMEM limit: double-buffered output tile + resident cols + headroom.
    tile_bytes = tile_r * row_elems * 4
    vmem_limit = max(int(2 * tile_bytes + 4 * cols.size * 4 + 4 * 1024 * 1024),
                     32 * 1024 * 1024)

    packed = pl.pallas_call(
        _pos_encoding_kernel,
        out_shape=jax.ShapeDtypeStruct((packed_rows_padded, row_elems), jnp.float32),
        grid=(grid_n,),
        in_specs=[pl.BlockSpec((2, row_elems), lambda i: (0, 0))],
        out_specs=pl.BlockSpec((tile_r, row_elems), lambda i: (i, 0)),
        compiler_params=pltpu.CompilerParams(
            dimension_semantics=("parallel",),
            vmem_limit_bytes=vmem_limit,
        ),
    )(cols)

    # Strip grid/row padding; row-major reshape back to (max_len, d_model).
    enc = packed[:packed_rows].reshape(padded_len, d_model)[:max_len]
    return enc


class PositionalEncoding:
    """JAX/Pallas port of the PyTorch PositionalEncoding module."""

    def __init__(self, max_len: int, d_model: int):
        # Parameter-free; the "weight" is the deterministic sin/cos table,
        # computed on-device by the Pallas kernel.
        self.encoding = make_positional_encoding(max_len, d_model)

    def __call__(self, x: jax.Array) -> jax.Array:
        # x: (batch_size, length) -- values unused, only the length matters.
        batch_size, length = x.shape
        return self.encoding[:length, :]


def _reference_encoding(max_len: int, d_model: int) -> jnp.ndarray:
    """Pure-JAX reference matching the PyTorch __init__ math."""
    pos = jnp.arange(max_len, dtype=jnp.float32)[:, None]
    _2i = jnp.arange(0, d_model, 2, dtype=jnp.float32)
    enc = jnp.zeros((max_len, d_model), dtype=jnp.float32)
    enc = enc.at[:, 0::2].set(jnp.sin(pos / 10000.0 ** (_2i / d_model)))
    enc = enc.at[:, 1::2].set(jnp.cos(pos / 10000.0 ** (_2i / d_model)))
    return enc


if __name__ == "__main__":
    max_len, d_model = 64, 32
    batch, length = 2, 8

    key = jax.random.PRNGKey(0)
    # x plays the role of a token-id batch: shape (batch, length)
    x = jax.random.randint(key, (batch, length), 0, 100, dtype=jnp.int32)

    pe = PositionalEncoding(max_len, d_model)
    out = jax.block_until_ready(pe(x))

    assert out.shape == (length, d_model), out.shape
    ref = _reference_encoding(max_len, d_model)
    assert jnp.allclose(out, ref[:length, :], atol=1e-5, rtol=1e-5), "mismatch vs reference"
    assert jnp.allclose(pe.encoding, ref, atol=1e-5, rtol=1e-5), "full-table mismatch"

    # Exercise the padded path (max_len not a multiple of pack, grid row padding).
    enc2 = jax.block_until_ready(make_positional_encoding(50, 24))
    ref2 = _reference_encoding(50, 24)
    assert enc2.shape == (50, 24), enc2.shape
    assert jnp.allclose(enc2, ref2, atol=1e-5, rtol=1e-5), "padded-path mismatch"

    print("KERNEL_OK")
</pallas_src>

<mosaic_0001>
module attributes {stable_mosaic.version = 11 : i64} {
  func.func @_pos_encoding_kernel(%arg0: i32, %arg1: memref<2x128xf32, #tpu.memory_space<vmem>>, %arg2: memref<8x128xf32, #tpu.memory_space<vmem>>) attributes {dimension_semantics = [#tpu.dimension_semantics<parallel>], iteration_bounds = array<i64: 2>, scalar_prefetch = 0 : i64, scratch_operands = 0 : i64, tpu.core_type = #tpu.core_type<tc>, window_params = [{pipeline_mode = #tpu.pipeline_mode<synchronous>, transform_indices = @transform_0, window_bounds = array<i64: 2, 128>}, {transform_indices = @transform_1, window_bounds = array<i64: 8, 128>}]} {
    %c0 = arith.constant 0 : index
    %c0_0 = arith.constant 0 : index
    %0 = vector.load %arg1[%c0, %c0_0] : memref<2x128xf32, #tpu.memory_space<vmem>>, vector<1x128xf32>
    %c1 = arith.constant 1 : index
    %c0_1 = arith.constant 0 : index
    %1 = vector.load %arg1[%c1, %c0_1] : memref<2x128xf32, #tpu.memory_space<vmem>>, vector<1x128xf32>
    %c8_i32 = arith.constant 8 : i32
    %2 = arith.muli %arg0, %c8_i32 : i32
    %3 = tpu.iota {dimensions = array<i32: 0>} : vector<8x1xi32>
    %4 = vector.broadcast %2 : i32 to vector<8x1xi32>
    %5 = arith.addi %3, %4 : vector<8x1xi32>
    %6 = arith.sitofp %5 : vector<8x1xi32> to vector<8x1xf32>
    %7 = vector.broadcast %6 : vector<8x1xf32> to vector<8x128xf32>
    %8 = vector.broadcast %0 : vector<1x128xf32> to vector<8x128xf32>
    %9 = arith.mulf %7, %8 : vector<8x128xf32>
    %10 = vector.broadcast %1 : vector<1x128xf32> to vector<8x128xf32>
    %11 = arith.addf %9, %10 : vector<8x128xf32>
    %12 = math.sin %11 : vector<8x128xf32>
    %c0_2 = arith.constant 0 : index
    %c0_3 = arith.constant 0 : index
    %13 = vector.load %arg2[%c0_2, %c0_3] : memref<8x128xf32, #tpu.memory_space<vmem>>, vector<8x128xf32>
    tpu.vector_store %arg2[%c0_2, %c0_3], %12 {strides = array<i32>} : memref<8x128xf32, #tpu.memory_space<vmem>>, vector<8x128xf32>,
    return
  }
  func.func @transform_0(%arg0: i32) -> (i32, i32) {
    %c0_i32 = arith.constant 0 : i32
    %c0_i32_0 = arith.constant 0 : i32
    %c0_i32_1 = arith.constant 0 : i32
    return %c0_i32, %c0_i32_0 : i32, i32
  }
  func.func @transform_1(%arg0: i32) -> (i32, i32) {
    %c0_i32 = arith.constant 0 : i32
    %c0_i32_0 = arith.constant 0 : i32
    return %arg0, %c0_i32 : i32, i32
  }
}

</mosaic_0001>

<bundles_post_ra>
// kernel: tpu_custom_call.1
= control target key start
LH: loop header
LB: loop body
LE: loop exit
PB: predicated region body
PF: predicated region fallthrough
CT: control target
= control target key end

     0   :  { %6 = vsyncpa [#allocation3], 0  ;;  %s651_s0 = inlined_call_operand.hbm [shape: f32[2,128], index: 0, kind: input, shape index: {}]   ;;  %s652_s1 = inlined_call_operand.hbm [shape: f32[16,128], index: 1, kind: output, shape index: {}]  }
   0x1   :  { %7 = vsyncpa [#allocation4], 0 }
   0x2   :  { %9 = vsyncpa [#allocation4 + $0x1], 0  ;;  %s499_s6 = smov 0   ;;  %s501_s7 = smov 0  }
   0x3   :  { %s503_s8 = smov 0   ;;  %s505_s9 = smov 0  }
   0x4 LB: > { %s520_s10 = sadd.s32 4294967295, %s479_s9   ;;  %s304_s11 = sadd.s32 4294967294, %s479_s9   ;;  %s479_s9 = sphi %s505_s9, %s668_s9   ;;  %s475_s8 = sphi %s503_s8, %s667_s8   ;;  %s471_s7 = sphi %s501_s7, %s666_s7   ;;  %s467_s6 = sphi %s499_s6, %s665_s6  }
   0x5   : > { %s524_s12 = sadd.s32 1, %s479_s9   ;;  %s43_s13 = sadd.s32 1, %s475_s8 }
   0x6   : > { %s40_s14 = ssub.s32 %s479_s9, %s524_s12  ;;  %p53_p0 = scmp.ne.s32.totalorder %s475_s8, %s471_s7 }
   0x7   : > { %p41_p1 = scmp.eq.s32.totalorder %s40_s14, 0  ;;  %p54_p2 = scmp.eq.s32.totalorder %s520_s10, 1 }
   0x8   : > { %p59_p3 = scmp.ne.s32.totalorder %s471_s7, %s467_s6  ;;  %p60_p4 = scmp.eq.s32.totalorder %s304_s11, 1 }
   0x9   : > { %s535_s15 = scalar_select %p41_p1, %s475_s8, %s43_s13  }
   0xa   : > { %p537_p5 = por %p54_p2, %p53_p0  ;;  %p541_p6 = por %p60_p4, %p59_p3 }
   0xb   : > { %p305_p7 = scmp.ge.s32.totalorder %s479_s9, 1  ;;  %p67_p8 = scmp.lt.s32.totalorder %s479_s9, 3 }
   0xc   : > { %s656_s16 = scalar_select %p537_p5, 1, 0 }
   0xd   : > { %s657_s17 = scalar_select %p541_p6, 1, 0 }
   0xe   : > { %p653_p9 = scmp.eq.s32.totalorder %s520_s10, 0  ;;  %p548_p10 = pnand %p305_p7, %p67_p8 }
   0xf   : > { %s481_s19 = smov [#allocation2]   ;;  %s385_s24 = scalar_lea.hbm %s651_s0, 32 }
  0x10   : > { %s658_s18 = scalar_select %p548_p10, 1, 0 }
  0x11   : > { %s80_s20 = sshll.u32 %s481_s19, 4  ;;  %p331_p11 = pneg %p548_p10  ;;  %s81_s20 = int_to_ptr.vmem [resolvable:$true] %s80_s20 }
  0x12   : > { %p386_p13 = scmp.ne.s32.totalorder %s651_s0, %s385_s24  ;;  %p392_p3 = scmp.lt.u32.totalorder %s385_s24, %s651_s0 }
  0x13   : > { %p556_p12 = pnand %p653_p9, %p331_p11 }
  0x15   : > { %p387_p0 = pneg %p556_p12 }
  0x17   : > { %p388_p1 = pnand %p387_p0, %p386_p13 }
  0x19   : > { %p389_p2 = pneg %p388_p1 }
  0x1b   : > { %p394_p4 = pnand %p392_p3, %p389_p2 }
  0x1d   : > { %397 = shalt.err (!%p394_p4)
}
  0x1e   : > { %s398_s29 = scalar_lea.vmem %s81_s20, 32  ;;  %p406_p9 = scmp.lt.s32.totalorder %s81_s20, %s81_s20 }
  0x1f   : > { %p399_p7 = scmp.ne.s32.totalorder %s81_s20, %s398_s29  ;;  %p407_p6 = scmp.lt.s32.totalorder %s398_s29, %s398_s29 }
  0x21   : > { %p401_p8 = pnand %p399_p7, %p387_p0  ;;  %p408_p5 = por %p407_p6, %p406_p9 }
  0x23   : > { %p402_p11 = pneg %p401_p8 }
  0x25   : > { %p409_p10 = pnand %p408_p5, %p402_p11 }
  0x27   : > { %412 = shalt.err (!%p409_p10)
}
  0x28   : > { %334 = dma.hbm_to_vmem [thread:$0]  (!%p556_p12), %s651_s0, 32, %s81_s20, [#allocation3]  }
  0x29   : > { %p660_p13 = scmp.ne.s32.totalorder %s658_s18, 0 }
  0x2a   : > { %p661_p1 = scmp.eq.s32.totalorder (!%p660_p13), %s520_s10, 0 }
  0x2b   : > { %93 = sbr.rel (%p660_p13) target bundleno = 157 (0x9d), region = 24 }
  0x32   : > { %458 = dma.done.wait (%p661_p1), [#allocation3], 32   ;;  %p662_p0 = pmov %p661_p1 }
  0x33   : > { %s310_s3 = sshll.u32 %s520_s10, 3  ;;  %v111_v0 = vlaneseq  ;;  %v311_v5 = vld [vmem:[#allocation2] ss:$0 sm:$0xff]  ;;  %v312_v6 = vld [vmem:[#allocation2 + $0x1] ss:$0 sm:$0xff]  ;;  %s105_s4 = sand.u32 1, %s471_s7  }
  0x34   : > { %460 = vsyncadd (%p662_p0), [#allocation3], 4294967264  ;;  %v113_v1 = vstv %s310_s3  ;;  %v482_v20 = vmov 683565275   ;;  %v483_v22 = vmov 2475754826  }
  0x35   : > { %v112_v2 = vshrl.u32 %v111_v0, 7  ;;  %v484_v24 = vmov 2131351028   ;;  %v485_v26 = vmov 2102212464   ;;  %s309_s5 = sshll.u32 %s105_s4, 3 }
  0x36   : > { %v486_v28 = vmov 920167782   ;;  %v487_v35 = vmov 1326507024   ;;  %s107_s11 = scalar_lea.vmem [#allocation5], %s309_s5  ;;  %s318_s14 = sshll.u32 %s520_s10, 7 }
  0x37   : > { %v114_v3 = vadd.s32 %v113_v1, %v112_v2  ;;  %s245_s13 = sshll.u32 %s107_s11, 4  ;;  %s611_s20 = scalar_lea.hbm %s652_s1, %s318_s14  ;;  %s606_s13 = int_to_ptr.vmem [resolvable:$true] %s245_s13 }
  0x38   : > { %s232_s21 = scalar_lea.sflag [#allocation4], %s105_s4  ;;  %s413_s22 = scalar_lea.vmem %s606_s13, 128 }
  0x39   : > { %v115_v4 = vcvt.s32.f32 %v114_v3  ;;  %p414_p5 = scmp.ne.s32.totalorder %s606_s13, %s413_s22  ;;  %p663_p6 = scmp.ne.s32.totalorder %s656_s16, 0 }
  0x3a   : > { %s488_s10 = smov [#allocation5]  }
  0x3b   : > { %v120_v7 = vmul.f32 %v311_v5, %v115_v4  ;;  %p415_p9 = pnand %p414_p5, %p663_p6  ;;  %s417_s23 = sshll.u32 %s488_s10, 4  ;;  %s418_s23 = int_to_ptr.vmem [resolvable:$false] %s417_s23 }
  0x3c   : > { %s419_s24 = scalar_lea.vmem %s418_s23, 256  ;;  %p420_p12 = scmp.lt.s32.totalorder %s606_s13, %s418_s23 }
  0x3d   : > { %v583_v8 = vadd.f32 %v312_v6, %v120_v7  ;;  %p416_p10 = pneg %p415_p9  ;;  %p421_p2 = scmp.lt.s32.totalorder %s419_s24, %s413_s22 }
  0x3f   : > { %v129_v9 = vand.u32 2139095040, %v583_v8  ;;  %v126_v11 = vand.u32 2147483647, %v583_v8  ;;  %vm128_vm7 = vcmp.lt.s32.totalorder %v583_v8, 0  ;;  %vm218_vm12 = vweird.f32 %v583_v8  ;;  %p422_p3 = por %p421_p2, %p420_p12 }
  0x41   : > { %v130_v10 = vshrl.u32 %v129_v9, 23  ;;  %v133_v14 = vand.u32 8388607, %v126_v11  ;;  %vm127_vm8 = vcmp.le.f32.partialorder %v126_v11, 0.7853982  ;;  %p423_p4 = pnand %p422_p3, %p416_p10 }
  0x43   : > { %v313_v12 = vadd.s32 4294967169, %v130_v10  ;;  %v134_v17 = vor.u32 8388608, %v133_v14 }
  0x45   : > { %v136_v13 = vadd.s32 1, %v313_v12  ;;  %v174_v37 = vshll.u32 %v134_v17, 8 }
  0x47   : > { %vm137_vm0 = vcmp.gt.s32.totalorder %v136_v13, 0 }
  0x48   : > { %v138_v15 = vsel %vm137_vm0, %v136_v13, 0 }
  0x49   : > { %v140_v16 = vand.u32 31, %v138_v15  ;;  %v139_v18 = vshrl.u32 %v138_v15, 5 }
  0x4b   : > { %v141_v19 = vsub.s32 32, %v140_v16  ;;  %v143_v21 = vshll.u32 %v482_v20, %v140_v16  ;;  %v146_v23 = vshll.u32 %v483_v22, %v140_v16  ;;  %v149_v25 = vshll.u32 %v484_v24, %v140_v16 }
  0x4c   : > { %v152_v27 = vshll.u32 %v485_v26, %v140_v16  ;;  %v155_v29 = vshll.u32 %v486_v28, %v140_v16  ;;  %vm158_vm1 = vcmp.lt.s32.totalorder %v139_v18, 1  ;;  %vm161_vm2 = vcmp.lt.s32.totalorder %v139_v18, 4 }
  0x4d   : > { %v142_v30 = vshrl.u32 %v482_v20, %v141_v19  ;;  %v144_v31 = vshrl.u32 %v483_v22, %v141_v19  ;;  %v147_v32 = vshrl.u32 %v484_v24, %v141_v19  ;;  %v150_v33 = vshrl.u32 %v485_v26, %v141_v19 }
  0x4e   : > { %v153_v34 = vshrl.u32 %v486_v28, %v141_v19  ;;  %v156_v36 = vshrl.u32 %v487_v35, %v141_v19  ;;  %vm159_vm3 = vcmp.lt.s32.totalorder %v139_v18, 2  ;;  %vm160_vm4 = vcmp.lt.s32.totalorder %v139_v18, 3 }
  0x4f   : > { %v145_v38 = vor.u32 %v144_v31, %v143_v21  ;;  %v148_v39 = vor.u32 %v147_v32, %v146_v23  ;;  %v151_v40 = vor.u32 %v150_v33, %v149_v25 }
  0x50   : > { %v154_v41 = vor.u32 %v153_v34, %v152_v27  ;;  %v157_v42 = vor.u32 %v156_v36, %v155_v29 }
  0x51   : > { %v162_v43 = vsel %vm158_vm1, %v142_v30, %v145_v38  ;;  %v163_v44 = vsel %vm161_vm2, %v151_v40, 2102212464  ;;  %v166_v45 = vsel %vm158_vm1, %v145_v38, %v148_v39  ;;  %v170_v46 = vsel %vm158_vm1, %v148_v39, %v151_v40 }
  0x52   : > { %v164_v47 = vsel %vm160_vm4, %v148_v39, %v163_v44  ;;  %v167_v48 = vsel %vm161_vm2, %v154_v41, 920167782  ;;  %v171_v49 = vsel %vm161_vm2, %v157_v42, 1326507024 }
  0x53   : > { %v168_v50 = vsel %vm160_vm4, %v151_v40, %v167_v48  ;;  %v172_v51 = vsel %vm160_vm4, %v154_v41, %v171_v49  ;;  %v165_v52 = vsel %vm159_vm3, %v162_v43, %v164_v47 }
  0x54   : > { %v169_v53 = vsel %vm159_vm3, %v166_v45, %v168_v50  ;;  %v173_v54 = vsel %vm159_vm3, %v170_v46, %v172_v51  ;;  %v181_v59 = vmul.u32 %v174_v37, %v165_v52 }
  0x55   : > { %v589_v55 = vmul.u32.u64.low %v174_v37, %v173_v54  ;;  %v590_v56 = vmul.u32.u64.high %v174_v37, %v173_v54, %v589_v55  ;;  %v592_v57 = vmul.u32.u64.low %v174_v37, %v169_v53  ;;  %v593_v58 = vmul.u32.u64.high %v174_v37, %v169_v53, %v592_v57 }
  0x57   : > { %vm183_vm5 = vc.u32 %v590_v56, %v592_v57  ;;  %v184_v60 = vadd.s32 1, %v593_v58  ;;  %v182_v7 = vadd.s32 %v592_v57, %v590_v56 }
  0x59   : > { %v185_v61 = vsel %vm183_vm5, %v184_v60, %v593_v58 }
  0x5a   : > { %v186_v62 = vadd.s32 %v185_v61, %v181_v59 }
  0x5c   : > { %v187_v63 = vadd.s32 536870912, %v186_v62 }
  0x5e   : > { %v188_v0 = vshrl.u32 %v187_v63, 30 }
  0x60   : > { %v189_v1 = vshll.u32 %v188_v0, 30  ;;  %v212_v21 = vsub.s32 4, %v188_v0 }
  0x62   : > { %v190_v2 = vsub.s32 %v186_v62, %v189_v1  ;;  %v213_v24 = vsel %vm128_vm7, %v212_v21, %v188_v0 }
  0x63   : > { %v215_v27 = vsel %vm127_vm8, 0, %v213_v24 }
  0x64   : > { %v192_v3 = vsub.s32 0, %v190_v2  ;;  %v219_v28 = vadd.s32 3, %v215_v27 }
  0x66   : > { %v314_v4 = vmin.u32 %v192_v3, %v190_v2  ;;  %v220_v29 = vand.u32 3, %v219_v28 }
  0x68   : > { %v194_v5 = vclz %v314_v4  ;;  %vm225_vm9 = vcmp.eq.s32.totalorder %v220_v29, 2  ;;  %vm222_vm10 = vcmp.eq.s32.totalorder %v220_v29, 0  ;;  %vm221_vm11 = vcmp.lt.s32.totalorder %v220_v29, 2 }
  0x6a   : > { %v315_v6 = vadd.s32 4294967294, %v194_v5 }
  0x6c   : > { %vm316_vm6 = vcmp.lt.s32.totalorder %v315_v6, 0 }
  0x6d   : > { %v197_v9 = vsel %vm316_vm6, 0, %v315_v6 }
  0x6e   : > { %v198_v10 = vsub.s32 32, %v197_v9  ;;  %v199_v12 = vshll.u32 %v190_v2, %v197_v9  ;;  %v202_v13 = vsub.s32 4294967266, %v197_v9 }
  0x70   : > { %v200_v14 = vshrl.u32 %v182_v7, %v198_v10  ;;  %v203_v15 = vadd.s32 127, %v202_v13 }
  0x72   : > { %v201_v16 = vor.u32 %v200_v14, %v199_v12  ;;  %v204_v17 = vshll.u32 %v203_v15, 23 }
  0x74   : > { %v205_v18 = vor.u32 4788187, %v204_v17  ;;  %v208_v19 = vcvt.s32.f32 %v201_v16 }
  0x76   : > { %v206_v20 = vand.u32 2147483647, %v205_v18 }
  0x78   : > { %v209_v22 = vmul.f32 %v208_v19, %v206_v20 }
  0x7a   : > { %v210_v23 = vxor.u32 2147483648, %v209_v22 }
  0x7c   : > { %v211_v25 = vsel %vm128_vm7, %v210_v23, %v209_v22 }
  0x7d   : > { %v214_v26 = vsel %vm127_vm8, %v583_v8, %v211_v25 }
  0x7e   : > { %381 = vcosq.f32 %v214_v26 }
  0x7f   : > { %383 = vsinq.f32 %v214_v26 }
  0x88   : > { %v382_v30 = vpop.eup %381 }
  0x89   : > { %v384_v31 = vpop.eup %383  ;;  %v226_v32 = vxor.u32 2147483648, %v382_v30 }
  0x8a   : > { %v223_v11 = vxor.u32 2147483648, %v384_v31 }
  0x8b   : > { %v227_v33 = vsel %vm225_vm9, %v226_v32, %v384_v31 }
  0x8c   : > { %v224_v34 = vsel %vm222_vm10, %v382_v30, %v223_v11 }
  0x8d   : > { %v228_v35 = vsel %vm221_vm11, %v224_v34, %v227_v33 }
  0x8e   : > { %v229_v36 = vsel %vm218_vm12, nan, %v228_v35 }
  0x8f   : > { %230 = vst [vmem:[%s107_s11] sm:$0xff] %v229_v36 }
  0x90   : > { %426 = shalt.err (!%p423_p4)
}
  0x91   : > { %s427_s25 = scalar_lea.hbm %s611_s20, 128  ;;  %s431_s28 = scalar_lea.hbm %s652_s1, 256 }
  0x92   : > { %p428_p7 = scmp.ne.s32.totalorder %s611_s20, %s427_s25  ;;  %p432_p13 = scmp.lt.u32.totalorder %s611_s20, %s652_s1 }
  0x93   : > { %p433_p1 = scmp.lt.u32.totalorder %s431_s28, %s427_s25  ;;  %p435_p5 = scmp.lt.u32.totalorder %s427_s25, %s611_s20 }
  0x94   : > { %p429_p8 = pnand %p428_p7, %p663_p6 }
  0x95   : > { %p434_p0 = por %p433_p1, %p432_p13 }
  0x96   : > { %p430_p11 = pneg %p429_p8 }
  0x97   : > { %p436_p9 = por %p435_p5, %p434_p0 }
  0x99   : > { %p437_p10 = pnand %p436_p9, %p430_p11 }
  0x9b   : > { %440 = shalt.err (!%p437_p10)
}
  0x9c   : > { %329 = dma.vmem_to_hbm [thread:$0]  (%p663_p6), %s606_s13, 128, %s611_s20, %s232_s21  }
  0x9d PF: > { %p341_p12 = scmp.ge.s32.totalorder %s479_s9, 2  ;;  %s257_s2 = sand.u32 1, %s467_s6  }
  0x9e   : > { %p664_p2 = scmp.ne.s32.totalorder %s657_s17, 0  ;;  %s258_s3 = scalar_lea.sflag [#allocation4], %s257_s2 }
  0xa0   : > { %p336_p3 = pnand %p341_p12, %p664_p2 }
  0xa2   : > { %462 = dma.done.wait (!%p336_p3), %s258_s3, 128  }
  0xa3   : > { %464 = vsyncadd (!%p336_p3), %s258_s3, 4294967168  ;;  %p12_p4 = scmp.ge.s32.totalorder %s524_s12, 4   ;;  %s665_s6 = smov %s471_s7 }
  0xa4   : > { %s666_s7 = smov %s475_s8  ;;  %s667_s8 = smov %s535_s15 }
  0xa5   : > { %s668_s9 = smov %s524_s12  ;;  %14 = sbr.rel (!%p12_p4) target bundleno = 4 (0x4), region = 61 }
  0xac   :  { %263 = vsyncpa [#allocation3], 1 }
  0xad   :  { %265 = vsyncpa [#allocation3 + $0x1], 1 }
  0xae   :  { %266 = vsyncpa [#allocation4], 1 }
  0xaf   :  { %268 = vsyncpa [#allocation4 + $0x1], 1 }

</bundles_post_ra>
